<compile_context>
chip_gen: v6e
topology: v6e:2x2x1
jax: 0.10.0
libtpu: 0.0.40
codegen_flags: <defaults>
</compile_context>

<pallas_src>
import functools

import jax
import jax.numpy as jnp
from jax import lax
from jax.experimental import pallas as pl
from jax.experimental.pallas import tpu as pltpu


_MIN_BLOCK_BYTES = 1 << 20                    # ~1 MiB per step amortizes step overhead
_SINGLE_BUFFER_WEIGHTS_MIN_BYTES = 2 << 20    # only bother single-buffering big weights
_FUSE_HEIGHT_PASS = False                     # see "fused" branch in _resize_kernel


def _vmem_limits():
    """Generation-aware VMEM numbers (v5e/v6e: 128 MiB, v7x: 64 MiB per core)."""
    try:
        cap = int(getattr(pltpu.get_tpu_info(), "vmem_capacity_bytes", 0)) or (64 << 20)
    except Exception:  # no TPU info available -> assume v7x-class (most restrictive)
        cap = 64 << 20
    limit = min(int(cap * 0.80), cap - (8 << 20))   # scoped-VMEM request
    budget = int(cap * 0.60)                        # working-set target for BC sizing
    return limit, budget


def _interp_matrix(out_size: int, in_size: int, dtype) -> jnp.ndarray:
    """1-D bilinear interpolation matrix, PyTorch align_corners=False semantics."""
    scale = in_size / out_size
    dst = jnp.arange(out_size, dtype=jnp.float32)
    src = jnp.maximum((dst + 0.5) * scale - 0.5, 0.0)       # clamp like PyTorch
    i0 = jnp.clip(jnp.floor(src).astype(jnp.int32), 0, in_size - 1)
    i1 = jnp.minimum(i0 + 1, in_size - 1)
    l1 = src - i0.astype(jnp.float32)
    l0 = 1.0 - l1
    m = jnp.zeros((out_size, in_size), jnp.float32)
    m = m.at[jnp.arange(out_size), i0].add(l0)
    m = m.at[jnp.arange(out_size), i1].add(l1)
    return m.astype(dtype)


def _choose_block_channels(nc, per_channel_bytes, budget_bytes):
    """Channel batch BC (a divisor of nc); 0 means "does not fit, fall back".

    Perf-review policy: do NOT simply maximize BC.  Target a per-step block of
    ~1 MiB (big enough to amortize the ~0.35 us/step overhead and issue large
    contiguous DMAs) and prefer an even grid with >= 4 steps so v7x's two
    TensorCores split evenly and the pipeline can overlap prefetch/writeback.
    """
    divisors = [d for d in range(1, nc + 1) if nc % d == 0]
    feasible = [d for d in divisors if d * per_channel_bytes <= budget_bytes]
    if not feasible:
        return 0

    def steps(d):
        return nc // d

    def big(d):
        return d * per_channel_bytes >= _MIN_BLOCK_BYTES

    # (pick_smallest_bc, predicate): big classes take the smallest BC that is
    # already >= 1 MiB (max steps); otherwise take the largest block that still
    # satisfies the step-count constraint.
    prefs = [
        (True,  lambda d: big(d) and steps(d) >= 4 and steps(d) % 2 == 0),
        (False, lambda d: steps(d) >= 4 and steps(d) % 2 == 0),
        (True,  lambda d: big(d) and steps(d) >= 2 and steps(d) % 2 == 0),
        (False, lambda d: steps(d) >= 2 and steps(d) % 2 == 0),
        (True,  lambda d: big(d) and steps(d) >= 2),
        (False, lambda d: steps(d) >= 2),
    ]
    for pick_smallest, pred in prefs:
        cands = [d for d in feasible if pred(d)]
        if cands:
            return min(cands) if pick_smallest else max(cands)
    return max(feasible)


def _resize_kernel(wh_ref, wwt_ref, x_ref, o_ref, *, mode, compute_dtype):
    # wh_ref : (OH, H)   height-pass interpolation matrix
    # wwt_ref: (W, OW)   width-pass matrix, pre-transposed on the host
    # x_ref  : (BC, H, W)       o_ref: (BC, OH, OW)
    bc, h, w = x_ref.shape
    _, oh, ow = o_ref.shape

    x = x_ref[...].astype(compute_dtype)   # no-op when dtypes already match
    wh = wh_ref[...]
    wwt = wwt_ref[...]

    # NOTE on precision: dots keep their native operand dtype with f32
    # accumulation (preferred_element_type).  We deliberately do not force bf16
    # operands on the f32 path (v5e suggestion) to preserve ~1e-5 parity with
    # the PyTorch f32 reference; resize weights sum to 1 so default MXU
    # precision is sufficient.

    if mode == "fused":
        # Perf-review item: both passes as channel-fused 2-D MXU matmuls.  The
        # height pass works on the minor-transposed intermediate so its M dim is
        # BC*OW instead of BC tiny (OH,H)x(H,OW) matmuls, and no broadcast copy
        # of Wh is materialized.  Costs two batched minor-dim transposes (XLU).
        # Off by default (_FUSE_HEIGHT_PASS): rank-3 transpose lowering is not
        # validated on every jax/Mosaic version.
        t = jnp.dot(x.reshape(bc * h, w), wwt,
                    preferred_element_type=jnp.float32)                   # (BC*H, OW)
        tt = jnp.transpose(t.reshape(bc, h, ow), (0, 2, 1))               # (BC, OW, H)
        o2 = lax.dot_general(tt.reshape(bc * ow, h).astype(compute_dtype), wh,
                             dimension_numbers=(((1,), (1,)), ((), ())),
                             preferred_element_type=jnp.float32)          # (BC*OW, OH)
        out = jnp.transpose(o2.reshape(bc, ow, oh), (0, 2, 1))            # (BC, OH, OW)
    elif mode == "width_first":
        # Width pass fused across channels into the matmul M dimension.
        t = jnp.dot(x.reshape(bc * h, w), wwt,
                    preferred_element_type=jnp.float32)                   # (BC*H, OW)
        t = t.reshape(bc, h, ow).astype(compute_dtype)
        # Height pass batched over channels.  Broadcast once per grid step (not
        # inside any loop).
        whb = jnp.broadcast_to(wh, (bc, oh, h))
        out = lax.dot_general(whb, t,
                              dimension_numbers=(((2,), (1,)), ((0,), (0,))),
                              preferred_element_type=jnp.float32)         # (BC, OH, OW)
    else:  # "height_first": shrinking axis first -> smaller intermediate.
        whb = jnp.broadcast_to(wh, (bc, oh, h))
        t = lax.dot_general(whb, x,
                            dimension_numbers=(((2,), (1,)), ((0,), (0,))),
                            preferred_element_type=jnp.float32)           # (BC, OH, W)
        t = t.reshape(bc * oh, w).astype(compute_dtype)
        out = jnp.dot(t, wwt, preferred_element_type=jnp.float32)         # (BC*OH, OW)
        out = out.reshape(bc, oh, ow)

    o_ref[...] = out.astype(o_ref.dtype)


def _resize_bilinear_xla(img, size):
    """Pure-JAX gather-based path with identical PyTorch semantics.

    Used (a) as the correctness reference and (b) as the fallback when a single
    channel's working set does not fit the VMEM budget (no spatial tiling yet).
    """
    if isinstance(size, int):
        size = (size, size)
    oh, ow = size

    def coords(out_size, in_size):
        scale = in_size / out_size
        src = jnp.maximum(
            (jnp.arange(out_size, dtype=jnp.float32) + 0.5) * scale - 0.5, 0.0)
        i0 = jnp.clip(jnp.floor(src).astype(jnp.int32), 0, in_size - 1)
        i1 = jnp.minimum(i0 + 1, in_size - 1)
        l1 = src - i0.astype(jnp.float32)
        return i0, i1, l1

    n, c, h, w = img.shape
    y0, y1, ly = coords(oh, h)
    x0, x1, lx = coords(ow, w)
    imgf = img.astype(jnp.float32)

    top = imgf[:, :, y0, :]
    bot = imgf[:, :, y1, :]
    rows = top * (1.0 - ly)[None, None, :, None] + bot * ly[None, None, :, None]
    left = rows[:, :, :, x0]
    right = rows[:, :, :, x1]
    out = left * (1.0 - lx)[None, None, None, :] + right * lx[None, None, None, :]
    return out.astype(img.dtype)


@functools.partial(jax.jit, static_argnames=("size",))
def resize_bilinear(img: jnp.ndarray, size) -> jnp.ndarray:
    """F.interpolate(img, size=size, mode='bilinear', align_corners=False), NCHW."""
    if isinstance(size, int):
        size = (size, size)
    oh, ow = int(size[0]), int(size[1])
    n, c, h, w = img.shape
    nc = n * c

    # bf16 inputs stay bf16 on the MXU (f32 accumulation); everything else f32.
    compute_dtype = jnp.bfloat16 if img.dtype == jnp.bfloat16 else jnp.float32
    in_bytes = img.dtype.itemsize
    out_bytes = in_bytes
    cw_bytes = 2 if compute_dtype == jnp.bfloat16 else 4

    vmem_limit, vmem_budget = _vmem_limits()

    # --- VMEM accounting -----------------------------------------------------
    weight_bytes = (oh * h + w * ow) * cw_bytes
    single_buffer_weights = (
        hasattr(pl, "Buffered")
        and weight_bytes >= _SINGLE_BUFFER_WEIGHTS_MIN_BYTES)
    fixed_bytes = (1 if single_buffer_weights else 2) * weight_bytes

    inter = min(h * ow, oh * w)                    # first-pass intermediate
    per_channel = (
        2 * h * w * in_bytes                       # double-buffered input block
        + 2 * oh * ow * out_bytes                  # double-buffered output block
        + (h * w * cw_bytes if img.dtype != compute_dtype else 0)  # x.astype copy
        + inter * 4                                # f32 first-pass result
        + (inter * cw_bytes if compute_dtype == jnp.bfloat16 else 0)  # bf16 recast
        + oh * h * cw_bytes                        # broadcast Wh operand
        + oh * ow * 4                              # f32 second-pass result
    )

    bc = 0
    if fixed_bytes < vmem_budget:
        bc = _choose_block_channels(nc, per_channel, vmem_budget - fixed_bytes)
    if bc == 0:
        # Single-channel working set does not fit VMEM (e.g. 4K images in f32 on
        # v7x).  Fall back to the XLA gather path rather than failing to compile.
        return _resize_bilinear_xla(img, (oh, ow))

    wh = _interp_matrix(oh, h, compute_dtype)        # (OH, H)
    wwt = _interp_matrix(ow, w, compute_dtype).T     # (W, OW), transposed on host

    if _FUSE_HEIGHT_PASS:
        mode = "fused"
    else:
        # Shrinking dimension first minimizes the intermediate and FLOPs; a merged
        # leading dim that is not a multiple of 8 forces an (8,128) relayout of the
        # fused-matmul operand each step, so penalize it (perf-review item 1).
        cost_wf = h * w * ow + oh * h * ow
        cost_hf = oh * h * w + oh * w * ow
        if h % 8 != 0:
            cost_wf = int(cost_wf * 1.15)
        if oh % 8 != 0:
            cost_hf = int(cost_hf * 1.15)
        mode = "width_first" if cost_wf <= cost_hf else "height_first"

    x_flat = img.reshape(nc, h, w)
    kernel = functools.partial(_resize_kernel, mode=mode, compute_dtype=compute_dtype)

    # Weight matrices have a constant index_map: they are fetched once.  Request a
    # single buffer only when they are big enough for the second copy to matter.
    weight_kwargs = (
        {"pipeline_mode": pl.Buffered(1)} if single_buffer_weights else {})

    out_flat = pl.pallas_call(
        kernel,
        out_shape=jax.ShapeDtypeStruct((nc, oh, ow), img.dtype),
        grid_spec=pltpu.PrefetchScalarGridSpec(
            num_scalar_prefetch=0,
            grid=(nc // bc,),
            in_specs=[
                pl.BlockSpec((oh, h), lambda i: (0, 0), **weight_kwargs),  # Wh
                pl.BlockSpec((w, ow), lambda i: (0, 0), **weight_kwargs),  # Ww^T
                pl.BlockSpec((bc, h, w), lambda i: (i, 0, 0)),
            ],
            # OW < 128 means masked partial stores; a lane-dense slab would need
            # extra host-side transposes (an extra HBM round trip) -> accepted.
            out_specs=pl.BlockSpec((bc, oh, ow), lambda i: (i, 0, 0)),
        ),
        compiler_params=pltpu.CompilerParams(
            dimension_semantics=("parallel",),
            vmem_limit_bytes=vmem_limit,
        ),
    )(wh, wwt, x_flat)

    return out_flat.reshape(n, c, oh, ow)
    # TODO(synk): integer-dtype inputs (PyTorch-style rounding) and modes other
    # than 'bilinear' are out of scope for this kernel.


if __name__ == "__main__":
    key = jax.random.PRNGKey(0)
    x = jax.random.normal(key, (2, 4, 16, 16), dtype=jnp.float32)

    # Upscale (exercises the width-first path; grid = 4 even steps with BC=2).
    out_up = jax.block_until_ready(resize_bilinear(x, size=(24, 24)))
    ref_up = _resize_bilinear_xla(x, (24, 24))
    assert out_up.shape == (2, 4, 24, 24), out_up.shape
    assert jnp.allclose(out_up, ref_up, atol=1e-5, rtol=1e-5), "upscale mismatch"

    # Asymmetric downscale (exercises the height-first path).
    out_dn = jax.block_until_ready(resize_bilinear(x, size=(8, 20)))
    ref_dn = _resize_bilinear_xla(x, (8, 20))
    assert out_dn.shape == (2, 4, 8, 20), out_dn.shape
    assert jnp.allclose(out_dn, ref_dn, atol=1e-5, rtol=1e-5), "downscale mismatch"

    print("KERNEL_OK")
</pallas_src>

<mosaic_0001>
module attributes {stable_mosaic.version = 11 : i64} {
  func.func private @main(%arg0: i32) attributes {dimension_semantics = [#tpu.dimension_semantics<core_parallel>], iteration_bounds = array<i64: 2>, tpu.core_type = #tpu.core_type<sc_scalar_subcore>, window_params = []} {
    return
  }
}

module attributes {stable_mosaic.version = 11 : i64} {
  func.func private @main(%arg0: i32) attributes {dimension_semantics = [#tpu.dimension_semantics<core_parallel>], iteration_bounds = array<i64: 2>, tpu.core_type = #tpu.core_type<sc_scalar_subcore>, window_params = []} {
    return
  }
}

module attributes {stable_mosaic.version = 11 : i64} {
  func.func @_resize_kernel(%arg0: i32, %arg1: memref<24x16xf32, #tpu.memory_space<vmem>>, %arg2: memref<16x24xf32, #tpu.memory_space<vmem>>, %arg3: memref<2x16x16xf32, #tpu.memory_space<vmem>>, %arg4: memref<2x24x24xf32, #tpu.memory_space<vmem>>) attributes {dimension_semantics = [#tpu.dimension_semantics<parallel>], iteration_bounds = array<i64: 4>, scalar_prefetch = 0 : i64, scratch_operands = 0 : i64, tpu.core_type = #tpu.core_type<tc>, window_params = [{pipeline_mode = #tpu.pipeline_mode<synchronous>, transform_indices = @transform_0, window_bounds = array<i64: 24, 16>}, {pipeline_mode = #tpu.pipeline_mode<synchronous>, transform_indices = @transform_1, window_bounds = array<i64: 16, 24>}, {transform_indices = @transform_2, window_bounds = array<i64: 2, 16, 16>}, {transform_indices = @transform_3, window_bounds = array<i64: 2, 24, 24>}]} {
    %c0 = arith.constant 0 : index
    %c0_0 = arith.constant 0 : index
    %c0_1 = arith.constant 0 : index
    %0 = vector.load %arg3[%c0, %c0_0, %c0_1] : memref<2x16x16xf32, #tpu.memory_space<vmem>>, vector<2x16x16xf32>
    %c0_2 = arith.constant 0 : index
    %c0_3 = arith.constant 0 : index
    %1 = vector.load %arg1[%c0_2, %c0_3] : memref<24x16xf32, #tpu.memory_space<vmem>>, vector<24x16xf32>
    %c0_4 = arith.constant 0 : index
    %c0_5 = arith.constant 0 : index
    %2 = vector.load %arg2[%c0_4, %c0_5] : memref<16x24xf32, #tpu.memory_space<vmem>>, vector<16x24xf32>
    %3 = vector.shape_cast %0 : vector<2x16x16xf32> to vector<32x16xf32>
    %cst = arith.constant dense<0.000000e+00> : vector<32x24xf32>
    %4 = tpu.matmul %3, %2, %cst {dimension_numbers = #tpu.dot_dimension_numbers<[1], [0], [0], [1], [0, 0, 1, 1], [], []>} : vector<32x16xf32>, vector<16x24xf32>, vector<32x24xf32> -> vector<32x24xf32>
    %5 = vector.shape_cast %4 : vector<32x24xf32> to vector<2x16x24xf32>
    %6 = vector.shape_cast %1 : vector<24x16xf32> to vector<1x24x16xf32>
    %7 = vector.broadcast %6 : vector<1x24x16xf32> to vector<2x24x16xf32>
    %cst_6 = arith.constant dense<0.000000e+00> : vector<2x24x24xf32>
    %8 = tpu.matmul %7, %5, %cst_6 {dimension_numbers = #tpu.dot_dimension_numbers<[2], [1], [1], [2], [0, 0, 0, 1, 1, 2], [0], [0]>} : vector<2x24x16xf32>, vector<2x16x24xf32>, vector<2x24x24xf32> -> vector<2x24x24xf32>
    %c0_7 = arith.constant 0 : index
    %c0_8 = arith.constant 0 : index
    %c0_9 = arith.constant 0 : index
    %9 = vector.load %arg4[%c0_7, %c0_8, %c0_9] : memref<2x24x24xf32, #tpu.memory_space<vmem>>, vector<2x24x24xf32>
    tpu.vector_store %arg4[%c0_7, %c0_8, %c0_9], %8 {strides = array<i32>} : memref<2x24x24xf32, #tpu.memory_space<vmem>>, vector<2x24x24xf32>,
    return
  }
  func.func @transform_0(%arg0: i32) -> (i32, i32) {
    %c0_i32 = arith.constant 0 : i32
    %c0_i32_0 = arith.constant 0 : i32
    %c0_i32_1 = arith.constant 0 : i32
    return %c0_i32, %c0_i32_0 : i32, i32
  }
  func.func @transform_1(%arg0: i32) -> (i32, i32) {
    %c0_i32 = arith.constant 0 : i32
    %c0_i32_0 = arith.constant 0 : i32
    %c0_i32_1 = arith.constant 0 : i32
    return %c0_i32, %c0_i32_0 : i32, i32
  }
  func.func @transform_2(%arg0: i32) -> (i32, i32, i32) {
    %c0_i32 = arith.constant 0 : i32
    %c0_i32_0 = arith.constant 0 : i32
    %c0_i32_1 = arith.constant 0 : i32
    return %arg0, %c0_i32, %c0_i32_0 : i32, i32, i32
  }
  func.func @transform_3(%arg0: i32) -> (i32, i32, i32) {
    %c0_i32 = arith.constant 0 : i32
    %c0_i32_0 = arith.constant 0 : i32
    %c0_i32_1 = arith.constant 0 : i32
    return %arg0, %c0_i32, %c0_i32_0 : i32, i32, i32
  }
}

</mosaic_0001>

<bundles_post_ra>
// kernel: resize_bilinear.1
= control target key start
LH: loop header
LB: loop body
LE: loop exit
PB: predicated region body
PF: predicated region fallthrough
CT: control target
= control target key end

     0   :  { %8 = vsyncpa [#allocation3], 0  ;;  %s884_s0 = inlined_call_operand.vmem [shape: f32[24,16], index: 0, kind: input, shape index: {}]   ;;  %s885_s1 = inlined_call_operand.vmem [shape: f32[16,24], index: 1, kind: input, shape index: {}]   ;;  %s886_s2 = inlined_call_operand.vmem [shape: f32[8,16,16], index: 2, kind: input, shape index: {}]   ;;  %s887_s3 = inlined_call_operand.hbm [shape: f32[8,24,24], index: 3, kind: output, shape index: {}]  }
   0x1   :  { %10 = vsyncpa [#allocation3 + $0x1], 0  ;;  %s746_s12 = smov 0   ;;  %s748_s13 = smov 0  }
   0x2   :  { %s750_s14 = smov 0   ;;  %s752_s15 = smov 0  }
   0x3 LB: > { %s767_s16 = sadd.s32 4294967295, %s719_s15   ;;  %s535_s17 = sadd.s32 4294967294, %s719_s15   ;;  %s719_s15 = sphi %s752_s15, %s893_s15   ;;  %s715_s14 = sphi %s750_s14, %s892_s14   ;;  %s711_s13 = sphi %s748_s13, %s891_s13   ;;  %s707_s12 = sphi %s746_s12, %s890_s12  }
   0x4   : > { %s771_s18 = sadd.s32 1, %s719_s15   ;;  %s91_s19 = sadd.s32 1, %s715_s14 }
   0x5   : > { %s88_s20 = ssub.s32 %s719_s15, %s771_s18  ;;  %p101_p0 = scmp.ne.s32.totalorder %s715_s14, %s711_s13 }
   0x6   : > { %p89_p1 = scmp.eq.s32.totalorder %s88_s20, 0  ;;  %p102_p2 = scmp.eq.s32.totalorder %s767_s16, 3 }
   0x7   : > { %p107_p3 = scmp.ne.s32.totalorder %s711_s13, %s707_s12  ;;  %p108_p4 = scmp.eq.s32.totalorder %s535_s17, 3 }
   0x8   : > { %s782_s21 = scalar_select %p89_p1, %s715_s14, %s91_s19  }
   0x9   : > { %p784_p5 = por %p102_p2, %p101_p0  ;;  %p788_p6 = por %p108_p4, %p107_p3 }
   0xa   : > { %p538_p7 = scmp.ge.s32.totalorder %s719_s15, 1  ;;  %p142_p8 = scmp.lt.s32.totalorder %s719_s15, 5 }
   0xc   : > { %p143_p9 = pnand %p538_p7, %p142_p8 }
   0xd   : > { %s539_s28 = sshll.u32 (!%p143_p9), %s767_s16, 1  ;;  %s164_s17 = sand.u32 (!%p143_p9), 1, %s711_s13  }
   0xe   : > { %146 = sbr.rel (%p143_p9) target bundleno = 437 (0x1b5), region = 32  ;;  %p168_p10 = scmp.lt.s32.totalorder (!%p143_p9), %s539_s28, 7 }
   0xf   : > { %s614_s19 = smul.u32 (!%p143_p9), 48, %s164_s17  ;;  %s723_s30 = smov (!%p143_p9), [#allocation2]  }
  0x10   : > { %s615_s24 = smul.u32 (!%p143_p9), 768, %s767_s16  ;;  %s844_s16 = scalar_lea.sflag (!%p143_p9), [#allocation3], %s164_s17 }
  0x11   : > { %s166_s20 = scalar_lea.vmem (!%p143_p9), [#allocation2], %s614_s19  ;;  %s663_s4 = sshll.u32 (!%p143_p9), %s723_s30, 4  ;;  %s664_s4 = int_to_ptr.vmem [resolvable:$false] %s663_s4 }
  0x12   : > { %s473_s25 = sshll.u32 (!%p143_p9), %s166_s20, 4  ;;  %s835_s25 = int_to_ptr.vmem [resolvable:$true] %s473_s25 }
  0x13   : > { %v183_v0 = vld [vmem:[%s885_s1 + $0x8] sm:$0xff]  ;;  %v182_v1 = vld [vmem:[%s885_s1] sm:$0xff]  ;;  %s895_s28 = smov (!%p168_p10, %s539_s28), 7  ;;  %vm184_vm0 = vcmask 130048   ;;  %v721_v6 = vmov 0.0   ;;  %vm722_vm1 = vmmov 0   ;;  %p666_p0 = scmp.lt.s32.totalorder %s835_s25, %s664_s4 }
  0x14   : > { %574 = vmatprep.subr.mxu0 %v183_v0  ;;  %610 = vmatprep.subr.mxu1 %v183_v0  ;;  %s557_s29 = sshll.u32 %s895_s28, 4  ;;  %v179_v9 = vld [vmem:[%s884_s0] sm:$0xff]  ;;  %v180_v12 = vld [vmem:[%s884_s0 + $0x8] sm:$0xff]  ;;  %v181_v13 = vld [vmem:[%s884_s0 + $0x10] sm:$0xff]  ;;  %vm451_vm2 = vcmask 195584   ;;  %s840_s28 = scalar_lea.hbm %s887_s3, %s615_s24 }
  0x15   : > { %575 = vmatpush3.msra.mxu0 %v183_v0  ;;  %612 = vmatpush3.msra.mxu1 %v183_v0  ;;  %s172_s5 = scalar_lea.vmem %s886_s2, %s557_s29  ;;  %s659_s29 = scalar_lea.vmem %s835_s25, 768 }
  0x16   : > { %576 = vmatprep.subr.mxu0 %v182_v1  ;;  %611 = vmatprep.subr.mxu1 %v182_v1  ;;  %v175_v2 = vld [vmem:[%s172_s5] sm:$0xff]  ;;  %v177_v3 = vld [vmem:[%s172_s5 + $0x10] sm:$0xff]  ;;  %v176_v4 = vld [vmem:[%s172_s5 + $0x8] sm:$0xff]  ;;  %p660_p11 = scmp.ne.s32.totalorder %s835_s25, %s659_s29 }
  0x17   : > { %577 = vmatpush3.msra.mxu0 %v182_v1  ;;  %613 = vmatpush3.msra.mxu1 %v182_v1  ;;  %v178_v5 = vld [vmem:[%s172_s5 + $0x18] sm:$0xff]  ;;  %s665_s5 = scalar_lea.vmem %s664_s4, 1536 }
  0x18   : > { %578 = vmatprep.mubr.msk.f32.mxu0 %vm184_vm0, %v175_v2  ;;  %581 = vmatprep.mubr.msk.f32.mxu1 %vm184_vm0, %v177_v3  ;;  %p661_p12 = pnand %p660_p11, %p784_p5  ;;  %p667_p1 = scmp.lt.s32.totalorder %s665_s5, %s659_s29 }
  0x19   : > { %579 = vmatmul.mubr.msk.f32.vlgmr.msra.gmra.mxu0 %vm184_vm0, %v176_v4  ;;  %582 = vmatmul.mubr.msk.f32.vlgmr.msra.gmra.mxu1 %vm184_vm0, %v178_v5 }
  0x1a   : > { %584 = vmatprep.subr.mxu1 %v721_v6  ;;  %597 = vmatprep.subr.mxu0 %v721_v6  ;;  %p662_p13 = pneg %p661_p12  ;;  %p668_p2 = por %p667_p1, %p666_p0 }
  0x1b   : > { %588 = vmatprep.mubr.msk.f32.mxu1 %vm722_vm1, %v721_v6  ;;  %601 = vmatprep.mubr.msk.f32.mxu0 %vm722_vm1, %v721_v6 }
  0x1c   : > { %p669_p3 = pnand %p668_p2, %p662_p13 }
  0xd9   : > { %v580_v7 = vpop.f32.mrf.mxu0  ;;  %v583_v8 = vpop.f32.mrf.mxu1 }
  0xda   : > { %585 = vmatpush3.msra.mxu1 %v580_v7  ;;  %598 = vmatpush3.msra.mxu0 %v583_v8 }
  0xdb   : > { %v263_v10 = vpop.f32.mrf.mxu0  ;;  %v273_v11 = vpop.f32.mrf.mxu1  ;;  %586 = vmatprep.subr.mxu1 %v721_v6  ;;  %599 = vmatprep.subr.mxu0 %v721_v6 }
  0xdc   : > { %587 = vmatpush3.msra.mxu1 %v263_v10  ;;  %600 = vmatpush3.msra.mxu0 %v273_v11 }
  0xdd   : > { %589 = vmatmul.mubr.msk.f32.vlgmr.msra.gmra.mxu1 %vm184_vm0, %v179_v9  ;;  %602 = vmatmul.mubr.msk.f32.vlgmr.msra.gmra.mxu0 %vm184_vm0, %v179_v9 }
  0xde   : > { %591 = vmatprep.mubr.msk.f32.mxu1 %vm722_vm1, %v721_v6  ;;  %604 = vmatprep.mubr.msk.f32.mxu0 %vm722_vm1, %v721_v6 }
  0xe1   : > { %592 = vmatmul.mubr.msk.f32.gmra.mxu1 %vm184_vm0, %v180_v12  ;;  %605 = vmatmul.mubr.msk.f32.gmra.mxu0 %vm184_vm0, %v180_v12 }
  0xe2   : > { %594 = vmatprep.mubr.msk.f32.mxu1 %vm722_vm1, %v721_v6  ;;  %607 = vmatprep.mubr.msk.f32.mxu0 %vm722_vm1, %v721_v6 }
  0xe5   : > { %595 = vmatmul.mubr.msk.f32.gmra.mxu1 %vm184_vm0, %v181_v13  ;;  %608 = vmatmul.mubr.msk.f32.gmra.mxu0 %vm184_vm0, %v181_v13 }
 0x19d   : > { %v357_v14 = vpop.f32.mrf.mxu1  ;;  %v437_v15 = vpop.f32.mrf.mxu0 }
 0x19e   : > { %452 = vst.msk [vmem:[%s166_s20] sm:$0xff] %vm451_vm2, %v357_v14  ;;  %455 = vst.msk [vmem:[%s166_s20 + $0x18] sm:$0xff] %vm451_vm2, %v437_v15 }
 0x19f   : > { %v590_v16 = vpop.f32.mrf.mxu1  ;;  %v603_v17 = vpop.f32.mrf.mxu0 }
 0x1a1   : > { %v362_v18 = vpop.f32.mrf.mxu1  ;;  %v442_v19 = vpop.f32.mrf.mxu0 }
 0x1a2   : > { %453 = vst.msk [vmem:[%s166_s20 + $0x8] sm:$0xff] %vm451_vm2, %v362_v18  ;;  %456 = vst.msk [vmem:[%s166_s20 + $0x20] sm:$0xff] %vm451_vm2, %v442_v19 }
 0x1a3   : > { %v593_v20 = vpop.f32.mrf.mxu1  ;;  %v606_v21 = vpop.f32.mrf.mxu0 }
 0x1a5   : > { %v367_v22 = vpop.f32.mrf.mxu1  ;;  %v447_v23 = vpop.f32.mrf.mxu0 }
 0x1a6   : > { %454 = vst.msk [vmem:[%s166_s20 + $0x10] sm:$0xff] %vm451_vm2, %v367_v22  ;;  %457 = vst.msk [vmem:[%s166_s20 + $0x28] sm:$0xff] %vm451_vm2, %v447_v23 }
 0x1a7   : > { %v596_v24 = vpop.f32.mrf.mxu1  ;;  %v609_v25 = vpop.f32.mrf.mxu0 }
 0x1a8   : > { %672 = shalt.err (!%p669_p3)
}
 0x1a9   : > { %s673_s6 = scalar_lea.hbm %s840_s28, 768  ;;  %s677_s9 = scalar_lea.hbm %s887_s3, 3072 }
 0x1aa   : > { %p674_p4 = scmp.ne.s32.totalorder %s840_s28, %s673_s6  ;;  %p678_p9 = scmp.lt.s32.totalorder %s840_s28, %s887_s3 }
 0x1ab   : > { %p679_p10 = scmp.lt.s32.totalorder %s677_s9, %s673_s6 }
 0x1ac   : > { %p675_p7 = pnand %p674_p4, %p784_p5 }
 0x1ad   : > { %p680_p11 = por %p679_p10, %p678_p9 }
 0x1ae   : > { %p676_p8 = pneg %p675_p7 }
 0x1b0   : > { %p681_p12 = pnand %p680_p11, %p676_p8 }
 0x1b2   : > { %684 = shalt.err (!%p681_p12)
}
 0x1b3   : > { %s724_s17 = smov 128   ;;  %s725_s19 = smov 8  }
 0x1b4   : > { %616 = dma.vmem_to_hbm [thread:$0]  (%p784_p5), %s835_s25, 768, %s840_s28, %s844_s16, %s724_s17, %s724_s17, %s725_s19  }
 0x1b5 PF: > { %p622_p13 = scmp.ge.s32.totalorder %s719_s15, 2  ;;  %s488_s20 = sand.u32 1, %s707_s12  }
 0x1b6   : > { %s489_s24 = scalar_lea.sflag [#allocation3], %s488_s20 }
 0x1b7   : > { %p619_p0 = pnand %p622_p13, %p788_p6 }
 0x1b9   : > { %p620_p1 = pneg %p619_p0 }
 0x1bb   : > { %702 = dma.done.wait (%p620_p1), %s489_s24, 768  }
 0x1bc   : > { %704 = vsyncadd (%p620_p1), %s489_s24, 4294966528  ;;  %p13_p2 = scmp.ge.s32.totalorder %s771_s18, 6   ;;  %s890_s12 = smov %s711_s13 }
 0x1bd   : > { %s891_s13 = smov %s715_s14  ;;  %s892_s14 = smov %s782_s21 }
 0x1be   : > { %s893_s15 = smov %s771_s18  ;;  %15 = sbr.rel (!%p13_p2) target bundleno = 3 (0x3), region = 67 }
 0x1c3   :  { %494 = vsyncpa [#allocation3], 1 }
 0x1c4   :  { %496 = vsyncpa [#allocation3 + $0x1], 1 }

</bundles_post_ra>
